<compile_context>
chip_gen: v6e
topology: v6e:2x2x1
jax: 0.10.0
libtpu: 0.0.40
codegen_flags: <defaults>
</compile_context>

<pallas_src>
import functools

import jax
import jax.numpy as jnp
from jax.experimental import pallas as pl
from jax.experimental.pallas import tpu as pltpu


def _round_up(x, m):
    return ((x + m - 1) // m) * m


def mpnn_kernel(idx_ref, cnt_ref, adj_ref, x_ref, wt_ref, b_ref, o_ref,
                acc_ref, *, tile_k, x_resident):
    i = pl.program_id(0)
    k = pl.program_id(1)

    @pl.when(k == 0)
    def _():
        acc_ref[...] = jnp.zeros_like(acc_ref)

    # Aggregate only over nonzero adjacency blocks of this row tile; padded
    # tail steps (k >= count) re-use the previously DMA'd block and skip compute.
    @pl.when(k < cnt_ref[i])
    def _():
        if x_resident:
            kb = idx_ref[i, k]                      # actual k-block index
            start = pl.multiple_of(kb * tile_k, tile_k)
            x_blk = x_ref[pl.ds(start, tile_k), :]  # slice resident X
        else:
            x_blk = x_ref[...]                      # streamed (tile_k, f_in_p) slab
        # bf16 x bf16 -> f32 accumulation on the MXU.
        acc_ref[...] += jnp.dot(adj_ref[...], x_blk,
                                preferred_element_type=jnp.float32)

    # Linear update + bias only on the final reduction step.
    @pl.when(k == pl.num_programs(1) - 1)
    def _():
        out = jnp.dot(acc_ref[...], wt_ref[...],
                      preferred_element_type=jnp.float32) + b_ref[...]
        o_ref[...] = out.astype(o_ref.dtype)


def mpnn_layer(adj, x, weight, bias, *, tile_m=None, tile_k=None,
               x_resident_bytes=4 << 20):
    """adj: [N, N], x: [N, F_in], weight: [F_out, F_in], bias: [F_out] -> [N, F_out]."""
    n, f_in = x.shape
    f_out = weight.shape[0]

    f_in_p = _round_up(f_in, 128)
    f_out_p = _round_up(f_out, 128)

    # --- tile selection: multiples of 256 (full-width MXU passes on v6e/v7x,
    # still 128-aligned for v5e). Large tiles to sit near the HBM roofline. ---
    if tile_m is None:
        tile_m = min(1024, _round_up(n, 256))
        # v7x has two TensorCores: give the "parallel" row axis >= 2 tiles
        # whenever the graph is big enough to split.
        if n > 256 and _round_up(n, tile_m) // tile_m < 2:
            tile_m = max(256, _round_up(-(-n // 2), 256))
    if tile_k is None:
        tile_k = min(2048, _round_up(n, 256))

    n_rows_p = _round_up(n, tile_m)
    n_cols_p = _round_up(n, tile_k)
    nb_m = n_rows_p // tile_m
    nb_k = n_cols_p // tile_k

    # Keep X fully VMEM-resident when small; otherwise stream a k-slab per step.
    x_resident = n_cols_p * f_in_p * 2 <= x_resident_bytes

    # --- plain-JAX glue: pad to lane-dense shapes, cast adj/X to bf16 ---
    # (bf16 is exact for edge multiplicities up to 256.)
    adj_p = jnp.zeros((n_rows_p, n_cols_p), jnp.bfloat16).at[:n, :n].set(
        adj.astype(jnp.bfloat16))
    x_p = jnp.zeros((n_cols_p, f_in_p), jnp.bfloat16).at[:n, :f_in].set(
        x.astype(jnp.bfloat16))
    wt_p = jnp.zeros((f_in_p, f_out_p), jnp.float32).at[:f_in, :f_out].set(
        weight.T.astype(jnp.float32))
    b_p = jnp.zeros((1, f_out_p), jnp.float32).at[0, :f_out].set(
        bias.astype(jnp.float32))

    # --- per-row-tile nonzero-block schedule (scalar-prefetched into SMEM) ---
    blk = adj_p.reshape(nb_m, tile_m, nb_k, tile_k)
    nz = (blk != 0).any(axis=(1, 3))                         # [nb_m, nb_k] bool
    blk_cnt = nz.sum(axis=1).astype(jnp.int32)               # nonzero blocks/row-tile
    order = jnp.argsort(jnp.logical_not(nz), axis=1).astype(jnp.int32)
    # Pad tail entries with the last valid block so the pipeline re-uses the
    # same DMA'd tile (no extra HBM traffic); compute is pl.when-skipped.
    last = jnp.take_along_axis(order, jnp.maximum(blk_cnt - 1, 0)[:, None], axis=1)
    k_iota = jnp.arange(nb_k, dtype=jnp.int32)[None, :]
    blk_idx = jnp.where(k_iota < blk_cnt[:, None], order, last).astype(jnp.int32)

    # --- explicit VMEM budget (v5e scoped default is only 16 MiB) ---
    adj_vmem = 2 * tile_m * tile_k * 2
    x_vmem = 2 * (n_cols_p * f_in_p * 2 if x_resident else tile_k * f_in_p * 2)
    wt_vmem = 2 * f_in_p * f_out_p * 4
    out_vmem = 2 * tile_m * f_out_p * 4
    acc_vmem = tile_m * f_in_p * 4
    working = adj_vmem + x_vmem + wt_vmem + out_vmem + acc_vmem
    vmem_limit = int(min(max(working + (8 << 20), 32 << 20), 56 << 20))

    if x_resident:
        x_spec = pl.BlockSpec((n_cols_p, f_in_p), lambda i, k, idx, cnt: (0, 0))
    else:
        x_spec = pl.BlockSpec((tile_k, f_in_p), lambda i, k, idx, cnt: (idx[i, k], 0))

    kernel = functools.partial(mpnn_kernel, tile_k=tile_k, x_resident=x_resident)

    out_p = pl.pallas_call(
        kernel,
        out_shape=jax.ShapeDtypeStruct((n_rows_p, f_out_p), jnp.float32),
        grid_spec=pltpu.PrefetchScalarGridSpec(
            num_scalar_prefetch=2,
            grid=(nb_m, nb_k),
            in_specs=[
                # adj: bf16, only nonzero blocks are (re-)fetched
                pl.BlockSpec((tile_m, tile_k), lambda i, k, idx, cnt: (i, idx[i, k])),
                x_spec,                                                     # X (bf16)
                pl.BlockSpec((f_in_p, f_out_p), lambda i, k, idx, cnt: (0, 0)),  # W^T
                pl.BlockSpec((1, f_out_p), lambda i, k, idx, cnt: (0, 0)),       # bias
            ],
            out_specs=pl.BlockSpec((tile_m, f_out_p), lambda i, k, idx, cnt: (i, 0)),
            scratch_shapes=[pltpu.VMEM((tile_m, f_in_p), jnp.float32)],
        ),
        compiler_params=pltpu.CompilerParams(
            dimension_semantics=("parallel", "arbitrary"),
            vmem_limit_bytes=vmem_limit),
    )(blk_idx, blk_cnt, adj_p, x_p, wt_p, b_p)

    return out_p[:n, :f_out]


if __name__ == "__main__":
    key = jax.random.PRNGKey(0)
    k_x, k_w, k_b = jax.random.split(key, 3)

    # --- Test 1: small bidirectional ring (mirrors dgl.graph((src+dst, dst+src))) ---
    N, F_IN, F_OUT = 8, 16, 32
    src = jnp.arange(N, dtype=jnp.int32)
    dst = (src + 1) % N
    e_src = jnp.concatenate([src, dst])
    e_dst = jnp.concatenate([dst, src])
    adj = jnp.zeros((N, N), dtype=jnp.float32).at[e_dst, e_src].add(1.0)

    features = jax.random.uniform(k_x, (N, F_IN), dtype=jnp.float32)
    w_bound = 1.0 / jnp.sqrt(F_IN)
    weight = jax.random.uniform(k_w, (F_OUT, F_IN), minval=-w_bound, maxval=w_bound)
    bias = jax.random.uniform(k_b, (F_OUT,), minval=-w_bound, maxval=w_bound)

    out = jax.block_until_ready(mpnn_layer(adj, features, weight, bias))
    ref = (adj @ features) @ weight.T + bias
    assert out.shape == (N, F_OUT)
    # Tolerance covers bf16 rounding of the features (aggregation stays f32).
    assert jnp.allclose(out, ref, atol=5e-2, rtol=5e-2), float(jnp.abs(out - ref).max())

    # --- Test 2: random sparse graph, N not a tile multiple, X-resident path ---
    N2, F_IN2, F_OUT2 = 300, 20, 40
    k_a2, k_x2, k_w2, k_b2 = jax.random.split(jax.random.PRNGKey(1), 4)
    adj2 = (jax.random.uniform(k_a2, (N2, N2)) < 0.02).astype(jnp.float32)
    x2 = jax.random.uniform(k_x2, (N2, F_IN2), dtype=jnp.float32)
    w2 = jax.random.uniform(k_w2, (F_OUT2, F_IN2), minval=-0.2, maxval=0.2)
    b2 = jax.random.uniform(k_b2, (F_OUT2,), minval=-0.2, maxval=0.2)

    out2 = jax.block_until_ready(mpnn_layer(adj2, x2, w2, b2))
    ref2 = (adj2 @ x2) @ w2.T + b2
    assert out2.shape == (N2, F_OUT2)
    assert jnp.allclose(out2, ref2, atol=5e-2, rtol=5e-2), float(jnp.abs(out2 - ref2).max())

    # --- Test 3: chain graph with multiple k-blocks: exercises the streamed-X
    # path (x_resident_bytes=0) and the block-sparse skip (counts < nb_k). ---
    N3, F_IN3, F_OUT3 = 520, 24, 48
    k_x3, k_w3, k_b3 = jax.random.split(jax.random.PRNGKey(2), 3)
    s3 = jnp.arange(N3 - 1, dtype=jnp.int32)
    d3 = s3 + 1
    es3 = jnp.concatenate([s3, d3])
    ed3 = jnp.concatenate([d3, s3])
    adj3 = jnp.zeros((N3, N3), dtype=jnp.float32).at[ed3, es3].add(1.0)
    x3 = jax.random.uniform(k_x3, (N3, F_IN3), dtype=jnp.float32)
    w3 = jax.random.uniform(k_w3, (F_OUT3, F_IN3), minval=-0.2, maxval=0.2)
    b3 = jax.random.uniform(k_b3, (F_OUT3,), minval=-0.2, maxval=0.2)

    out3 = jax.block_until_ready(
        mpnn_layer(adj3, x3, w3, b3, tile_m=256, tile_k=256, x_resident_bytes=0))
    ref3 = (adj3 @ x3) @ w3.T + b3
    assert out3.shape == (N3, F_OUT3)
    assert jnp.allclose(out3, ref3, atol=5e-2, rtol=5e-2), float(jnp.abs(out3 - ref3).max())

    print("KERNEL_OK")
</pallas_src>

<mosaic_0001>
module attributes {stable_mosaic.version = 11 : i64} {
  func.func @mpnn_kernel(%arg0: i32, %arg1: i32, %arg2: memref<1x1xi32, #tpu.memory_space<smem>>, %arg3: memref<1xi32, #tpu.memory_space<smem>>, %arg4: memref<256x256xbf16, #tpu.memory_space<vmem>>, %arg5: memref<256x128xbf16, #tpu.memory_space<vmem>>, %arg6: memref<128x128xf32, #tpu.memory_space<vmem>>, %arg7: memref<1x128xf32, #tpu.memory_space<vmem>>, %arg8: memref<256x128xf32, #tpu.memory_space<vmem>>, %arg9: memref<256x128xf32, #tpu.memory_space<vmem>>) attributes {dimension_semantics = [#tpu.dimension_semantics<parallel>, #tpu.dimension_semantics<arbitrary>], iteration_bounds = array<i64: 1, 1>, scalar_prefetch = 2 : i64, scratch_operands = 1 : i64, tpu.core_type = #tpu.core_type<tc>, window_params = [{transform_indices = @transform_0, window_bounds = array<i64: 256, 256>}, {pipeline_mode = #tpu.pipeline_mode<synchronous>, transform_indices = @transform_1, window_bounds = array<i64: 256, 128>}, {pipeline_mode = #tpu.pipeline_mode<synchronous>, transform_indices = @transform_2, window_bounds = array<i64: 128, 128>}, {pipeline_mode = #tpu.pipeline_mode<synchronous>, transform_indices = @transform_3, window_bounds = array<i64: 1, 128>}, {transform_indices = @transform_4, window_bounds = array<i64: 256, 128>}]} {
    %c0_i32 = arith.constant 0 : i32
    %0 = arith.cmpi eq, %arg1, %c0_i32 : i32
    %1 = arith.extui %0 : i1 to i32
    %c0_i32_0 = arith.constant 0 : i32
    %2 = arith.cmpi ne, %1, %c0_i32_0 : i32
    scf.if %2 {
      %cst = arith.constant 0.000000e+00 : f32
      %11 = vector.broadcast %cst : f32 to vector<256x128xf32>
      %c0 = arith.constant 0 : index
      %c0_4 = arith.constant 0 : index
      %12 = vector.load %arg9[%c0, %c0_4] : memref<256x128xf32, #tpu.memory_space<vmem>>, vector<256x128xf32>
      tpu.vector_store %arg9[%c0, %c0_4], %11 {strides = array<i32>} : memref<256x128xf32, #tpu.memory_space<vmem>>, vector<256x128xf32>,
    } else {
    }
    %3 = arith.index_cast %arg0 : i32 to index
    %4 = memref.load %arg3[%3] : memref<1xi32, #tpu.memory_space<smem>>
    %5 = arith.cmpi slt, %arg1, %4 : i32
    %6 = arith.extui %5 : i1 to i32
    %c0_i32_1 = arith.constant 0 : i32
    %7 = arith.cmpi ne, %6, %c0_i32_1 : i32
    scf.if %7 {
      %11 = arith.index_cast %arg0 : i32 to index
      %12 = arith.index_cast %arg1 : i32 to index
      %13 = memref.load %arg2[%11, %12] : memref<1x1xi32, #tpu.memory_space<smem>>
      %c256_i32 = arith.constant 256 : i32
      %14 = arith.muli %13, %c256_i32 : i32
      %15 = tpu.assume_multiple %14, 256 : i32
      %16 = arith.index_cast %15 : i32 to index
      %c0 = arith.constant 0 : index
      %17 = vector.load %arg5[%16, %c0] : memref<256x128xbf16, #tpu.memory_space<vmem>>, vector<256x128xbf16>
      %c0_4 = arith.constant 0 : index
      %c0_5 = arith.constant 0 : index
      %18 = vector.load %arg9[%c0_4, %c0_5] : memref<256x128xf32, #tpu.memory_space<vmem>>, vector<256x128xf32>
      %c0_6 = arith.constant 0 : index
      %c0_7 = arith.constant 0 : index
      %19 = vector.load %arg4[%c0_6, %c0_7] : memref<256x256xbf16, #tpu.memory_space<vmem>>, vector<256x256xbf16>
      %cst = arith.constant dense<0.000000e+00> : vector<256x128xf32>
      %20 = tpu.matmul %19, %17, %cst {dimension_numbers = #tpu.dot_dimension_numbers<[1], [0], [0], [1], [0, 0, 1, 1], [], []>} : vector<256x256xbf16>, vector<256x128xbf16>, vector<256x128xf32> -> vector<256x128xf32>
      %21 = arith.addf %18, %20 : vector<256x128xf32>
      %c0_8 = arith.constant 0 : index
      %c0_9 = arith.constant 0 : index
      %22 = vector.load %arg9[%c0_8, %c0_9] : memref<256x128xf32, #tpu.memory_space<vmem>>, vector<256x128xf32>
      tpu.vector_store %arg9[%c0_8, %c0_9], %21 {strides = array<i32>} : memref<256x128xf32, #tpu.memory_space<vmem>>, vector<256x128xf32>,
    } else {
    }
    %c0_i32_2 = arith.constant 0 : i32
    %8 = arith.cmpi eq, %arg1, %c0_i32_2 : i32
    %9 = arith.extui %8 : i1 to i32
    %c0_i32_3 = arith.constant 0 : i32
    %10 = arith.cmpi ne, %9, %c0_i32_3 : i32
    scf.if %10 {
      %c0 = arith.constant 0 : index
      %c0_4 = arith.constant 0 : index
      %11 = vector.load %arg9[%c0, %c0_4] : memref<256x128xf32, #tpu.memory_space<vmem>>, vector<256x128xf32>
      %c0_5 = arith.constant 0 : index
      %c0_6 = arith.constant 0 : index
      %12 = vector.load %arg6[%c0_5, %c0_6] : memref<128x128xf32, #tpu.memory_space<vmem>>, vector<128x128xf32>
      %cst = arith.constant dense<0.000000e+00> : vector<256x128xf32>
      %13 = tpu.matmul %11, %12, %cst {dimension_numbers = #tpu.dot_dimension_numbers<[1], [0], [0], [1], [0, 0, 1, 1], [], []>} : vector<256x128xf32>, vector<128x128xf32>, vector<256x128xf32> -> vector<256x128xf32>
      %c0_7 = arith.constant 0 : index
      %c0_8 = arith.constant 0 : index
      %14 = vector.load %arg7[%c0_7, %c0_8] : memref<1x128xf32, #tpu.memory_space<vmem>>, vector<1x128xf32>
      %15 = vector.broadcast %14 : vector<1x128xf32> to vector<256x128xf32>
      %16 = arith.addf %13, %15 : vector<256x128xf32>
      %c0_9 = arith.constant 0 : index
      %c0_10 = arith.constant 0 : index
      %17 = vector.load %arg8[%c0_9, %c0_10] : memref<256x128xf32, #tpu.memory_space<vmem>>, vector<256x128xf32>
      tpu.vector_store %arg8[%c0_9, %c0_10], %16 {strides = array<i32>} : memref<256x128xf32, #tpu.memory_space<vmem>>, vector<256x128xf32>,
    } else {
    }
    return
  }
  func.func @transform_0(%arg0: i32, %arg1: i32, %arg2: memref<1x1xi32, #tpu.memory_space<smem>>, %arg3: memref<1xi32, #tpu.memory_space<smem>>) -> (i32, i32) {
    %0 = arith.index_cast %arg0 : i32 to index
    %1 = arith.index_cast %arg1 : i32 to index
    %2 = memref.load %arg2[%0, %1] : memref<1x1xi32, #tpu.memory_space<smem>>
    %c0_i32 = arith.constant 0 : i32
    return %arg0, %2 : i32, i32
  }
  func.func @transform_1(%arg0: i32, %arg1: i32, %arg2: memref<1x1xi32, #tpu.memory_space<smem>>, %arg3: memref<1xi32, #tpu.memory_space<smem>>) -> (i32, i32) {
    %c0_i32 = arith.constant 0 : i32
    %c0_i32_0 = arith.constant 0 : i32
    %c0_i32_1 = arith.constant 0 : i32
    return %c0_i32, %c0_i32_0 : i32, i32
  }
  func.func @transform_2(%arg0: i32, %arg1: i32, %arg2: memref<1x1xi32, #tpu.memory_space<smem>>, %arg3: memref<1xi32, #tpu.memory_space<smem>>) -> (i32, i32) {
    %c0_i32 = arith.constant 0 : i32
    %c0_i32_0 = arith.constant 0 : i32
    %c0_i32_1 = arith.constant 0 : i32
    return %c0_i32, %c0_i32_0 : i32, i32
  }
  func.func @transform_3(%arg0: i32, %arg1: i32, %arg2: memref<1x1xi32, #tpu.memory_space<smem>>, %arg3: memref<1xi32, #tpu.memory_space<smem>>) -> (i32, i32) {
    %c0_i32 = arith.constant 0 : i32
    %c0_i32_0 = arith.constant 0 : i32
    %c0_i32_1 = arith.constant 0 : i32
    return %c0_i32, %c0_i32_0 : i32, i32
  }
  func.func @transform_4(%arg0: i32, %arg1: i32, %arg2: memref<1x1xi32, #tpu.memory_space<smem>>, %arg3: memref<1xi32, #tpu.memory_space<smem>>) -> (i32, i32) {
    %c0_i32 = arith.constant 0 : i32
    %c0_i32_0 = arith.constant 0 : i32
    return %arg0, %c0_i32 : i32, i32
  }
}

</mosaic_0001>

<bundles_post_ra>
// kernel: tpu_custom_call.1
= control target key start
LH: loop header
LB: loop body
LE: loop exit
PB: predicated region body
PF: predicated region fallthrough
CT: control target
= control target key end

     0   :  { %s1684_s0 = inlined_call_operand.<no memory space> [shape: s32[1,1], index: 0, kind: input, shape index: {}]   ;;  %s1685_s1 = inlined_call_operand.<no memory space> [shape: s32[1], index: 1, kind: input, shape index: {}]   ;;  %s1686_s2 = inlined_call_operand.hbm [shape: bf16[256,256], index: 2, kind: input, shape index: {}]   ;;  %s1687_s3 = inlined_call_operand.hbm [shape: bf16[256,128], index: 3, kind: input, shape index: {}]   ;;  %s1688_s4 = inlined_call_operand.hbm [shape: f32[128,128], index: 4, kind: input, shape index: {}]   ;;  %s1689_s5 = inlined_call_operand.vmem [shape: f32[1,128], index: 5, kind: input, shape index: {}]   ;;  %s1690_s6 = inlined_call_operand.hbm [shape: f32[256,128], index: 6, kind: output, shape index: {}]  }
   0x1   :  { %11 = sst [smem:[#allocation4]] %s1684_s0 }
   0x2   :  { %13 = vsyncpa [#allocation7], 0 }
   0x3   :  { %14 = vsyncpa [#allocation10], 0 }
   0x4   :  { %15 = vsyncpa [#allocation8], 0  ;;  %s1545_s23 = smov [#allocation9]   ;;  %s21_s25 = sld [smem:[#allocation4]] }
   0x5   :  { %s40_s24 = sshll.u32 %s1545_s23, 4  ;;  %s41_s24 = int_to_ptr.vmem [resolvable:$true] %s40_s24 }
   0x6   :  { %s1465_s26 = scalar_lea.vmem %s41_s24, 2048  ;;  %p1470_p1 = scmp.lt.s32.totalorder %s41_s24, %s41_s24 }
   0x7   :  { %p1466_p0 = scmp.ne.s32.totalorder %s41_s24, %s1465_s26  ;;  %p1471_p2 = scmp.lt.s32.totalorder %s1465_s26, %s1465_s26 }
   0x9   :  { %p1472_p3 = por %p1471_p2, %p1470_p1 }
   0xb   :  { %p1473_p4 = pnand %p1472_p3, %p1466_p0 }
   0xd   :  { %1476 = shalt.err (!%p1473_p4)
}
   0xe   :  { %s1546_s27 = smov 64   ;;  %s1547_s28 = smov 4  }
   0xf   :  { %46 = dma.hbm_to_vmem [thread:$0]  %s1687_s3, 2048, %s41_s24, [#allocation10], %s1546_s27, %s1546_s27, %s1547_s28  }
  0x10   :  { %s1548_s0 = smov [#allocation6]   ;;  %s1549_s8 = smov [#allocation11]  }
  0x11   :  { %s28_s7 = sshll.u32 %s1548_s0, 4  ;;  %s52_s9 = sshll.u32 %s1549_s8, 4  ;;  %s29_s7 = int_to_ptr.vmem [resolvable:$true] %s28_s7  ;;  %s1595_s9 = int_to_ptr.vmem [resolvable:$true] %s52_s9 }
  0x12   :  { %s1095_s10 = sshll.u32 %s21_s25, 7  ;;  %s1479_s17 = scalar_lea.hbm %s1686_s2, 4096 }
  0x13   :  { %s27_s13 = scalar_lea.hbm %s1686_s2, %s1095_s10 }
  0x14   :  { %s1477_s14 = scalar_lea.hbm %s27_s13, 4096  ;;  %p1480_p6 = scmp.lt.s32.totalorder %s27_s13, %s1686_s2 }
  0x15   :  { %p1478_p5 = scmp.ne.s32.totalorder %s27_s13, %s1477_s14  ;;  %p1481_p7 = scmp.lt.s32.totalorder %s1479_s17, %s1477_s14 }
  0x17   :  { %p1482_p8 = por %p1481_p7, %p1480_p6 }
  0x19   :  { %p1483_p9 = pnand %p1482_p8, %p1478_p5 }
  0x1b   :  { %1486 = shalt.err (!%p1483_p9)
}
  0x1c   :  { %s1487_s19 = scalar_lea.vmem %s29_s7, 4096  ;;  %p1492_p11 = scmp.lt.s32.totalorder %s29_s7, %s29_s7 }
  0x1d   :  { %p1488_p10 = scmp.ne.s32.totalorder %s29_s7, %s1487_s19  ;;  %p1493_p12 = scmp.lt.s32.totalorder %s1487_s19, %s1487_s19 }
  0x1f   :  { %p1494_p13 = por %p1493_p12, %p1492_p11 }
  0x21   :  { %p1495_p0 = pnand %p1494_p13, %p1488_p10 }
  0x23   :  { %1498 = shalt.err (!%p1495_p0)
}
  0x24   :  { %s1550_s20 = smov 128   ;;  %s1551_s21 = smov 8  }
  0x25   :  { %34 = dma.hbm_to_vmem [thread:$0]  %s27_s13, 4096, %s29_s7, [#allocation7], %s1550_s20, %s1550_s20, %s1551_s21  }
  0x26   :  { %s1507_s2 = scalar_lea.vmem %s1595_s9, 2048  ;;  %p1512_p2 = scmp.lt.s32.totalorder %s1595_s9, %s1595_s9 }
  0x27   :  { %p1508_p1 = scmp.ne.s32.totalorder %s1595_s9, %s1507_s2  ;;  %p1513_p3 = scmp.lt.s32.totalorder %s1507_s2, %s1507_s2 }
  0x29   :  { %p1514_p4 = por %p1513_p3, %p1512_p2 }
  0x2b   :  { %p1515_p5 = pnand %p1514_p4, %p1508_p1 }
  0x2d   :  { %1518 = shalt.err (!%p1515_p5)
}
  0x2e   :  { %58 = dma.hbm_to_vmem [thread:$0]  %s1688_s4, 2048, %s1595_s9, [#allocation10], %s1550_s20, %s1550_s20, %s1551_s21  }
  0x2f   :  { %1539 = dma.done.wait [#allocation7], 4096  }
  0x30   :  { %1540 = vsyncadd [#allocation7], 4294963200 }
  0x31   :  { %1541 = dma.done.wait [#allocation10], 4096  }
  0x32   :  { %1542 = vsyncadd [#allocation10], 4294963200  ;;  %v1552_v0 = vmov 0.0   ;;  %p1043_p6 = scmp.le.s32.totalorder %s1685_s1, 0 }
  0x33   :  { %80 = vst [vmem:[#allocation2 + $0xb0] sm:$0xff] %v1552_v0  ;;  %81 = vst [vmem:[#allocation2] sm:$0xff] %v1552_v0  ;;  %s120_s25 = sld [smem:[#allocation4]] (!%p1043_p6) }
  0x34   :  { %82 = vst [vmem:[#allocation2 + $0xd8] sm:$0xff] %v1552_v0  ;;  %83 = vst [vmem:[#allocation2 + $0x18] sm:$0xff] %v1552_v0 }
  0x35   :  { %84 = vst [vmem:[#allocation2 + $0x50] sm:$0xff] %v1552_v0  ;;  %85 = vst [vmem:[#allocation2 + $0x68] sm:$0xff] %v1552_v0 }
  0x36   :  { %86 = vst [vmem:[#allocation2 + $0x30] sm:$0xff] %v1552_v0  ;;  %87 = vst [vmem:[#allocation2 + $0x48] sm:$0xff] %v1552_v0 }
  0x37   :  { %88 = vst [vmem:[#allocation2 + $0x80] sm:$0xff] %v1552_v0  ;;  %89 = vst [vmem:[#allocation2 + $0x88] sm:$0xff] %v1552_v0 }
  0x38   :  { %90 = vst [vmem:[#allocation2 + $0xe8] sm:$0xff] %v1552_v0  ;;  %91 = vst [vmem:[#allocation2 + $0xb8] sm:$0xff] %v1552_v0 }
  0x39   :  { %92 = vst [vmem:[#allocation2 + $0x60] sm:$0xff] %v1552_v0  ;;  %93 = vst [vmem:[#allocation2 + $0xf0] sm:$0xff] %v1552_v0  ;;  %s1044_s26 = sshll.u32 (!%p1043_p6), %s120_s25, 8 }
  0x3a   :  { %94 = vst [vmem:[#allocation2 + $0x8] sm:$0xff] %v1552_v0  ;;  %95 = vst [vmem:[#allocation2 + $0x78] sm:$0xff] %v1552_v0  ;;  %s122_s27 = sshra.s32 (!%p1043_p6), %s1044_s26, 3 }
  0x3b   :  { %96 = vst [vmem:[#allocation2 + $0x38] sm:$0xff] %v1552_v0  ;;  %97 = vst [vmem:[#allocation2 + $0x58] sm:$0xff] %v1552_v0  ;;  %s1045_s28 = sshll.u32 (!%p1043_p6), %s122_s27, 2 }
  0x3c   :  { %98 = vst [vmem:[#allocation2 + $0x40] sm:$0xff] %v1552_v0  ;;  %99 = vst [vmem:[#allocation2 + $0xc8] sm:$0xff] %v1552_v0  ;;  %s1623_s29 = scalar_lea.vmem (!%p1043_p6), [#allocation9], %s1045_s28 }
  0x3d   :  { %100 = vst [vmem:[#allocation2 + $0xe0] sm:$0xff] %v1552_v0  ;;  %101 = vst [vmem:[#allocation2 + $0x90] sm:$0xff] %v1552_v0 }
  0x3e   :  { %102 = vst [vmem:[#allocation2 + $0x70] sm:$0xff] %v1552_v0  ;;  %103 = vst [vmem:[#allocation2 + $0xc0] sm:$0xff] %v1552_v0  ;;  %116 = sbr.rel (%p1043_p6) target bundleno = 361 (0x169), region = 37 }
  0x3f   :  { %104 = vst [vmem:[#allocation2 + $0xa8] sm:$0xff] %v1552_v0  ;;  %105 = vst [vmem:[#allocation2 + $0xd0] sm:$0xff] %v1552_v0 }
  0x40   :  { %106 = vst [vmem:[#allocation2 + $0x10] sm:$0xff] %v1552_v0  ;;  %107 = vst [vmem:[#allocation2 + $0x28] sm:$0xff] %v1552_v0 }
  0x41   :  { %108 = vst [vmem:[#allocation2 + $0xa0] sm:$0xff] %v1552_v0  ;;  %109 = vst [vmem:[#allocation2 + $0xf8] sm:$0xff] %v1552_v0 }
  0x42   :  { %110 = vst [vmem:[#allocation2 + $0x20] sm:$0xff] %v1552_v0  ;;  %111 = vst [vmem:[#allocation2 + $0x98] sm:$0xff] %v1552_v0 }
  0x43   :  { %v1411_v1 = vld [vmem:[#allocation6 + $0x4] ss:$8 sps:$4 sm:$0xff]   ;;  %v1393_v3 = vld [vmem:[%s1623_s29 + $0x78] sm:$0xff]   ;;  %v1395_v5 = vld [vmem:[%s1623_s29 + $0x70] sm:$0xff]  }
  0x44   :  { %v1414_v2 = vld [vmem:[#allocation6 + $0x84] ss:$8 sps:$4 sm:$0xff]   ;;  %510 = vmatprep.mubr.bf16.mxu0 %v1411_v1  ;;  %v1394_v4 = vld [vmem:[%s1623_s29 + $0x38] sm:$0xff]   ;;  %1096 = vmatprep.subr.bf16.mxu0 %v1393_v3  ;;  %v1396_v6 = vld [vmem:[%s1623_s29 + $0x30] sm:$0xff]  }
  0x45   :  { %574 = vmatprep.mubr.bf16.mxu1 %v1414_v2  ;;  %1336 = vmatprep.subr.bf16.mxu1 %v1393_v3  ;;  %v1397_v7 = vld [vmem:[%s1623_s29 + $0x68] sm:$0xff]   ;;  %v1399_v9 = vld [vmem:[%s1623_s29 + $0x60] sm:$0xff]   ;;  %v1401_v11 = vld [vmem:[%s1623_s29 + $0x58] sm:$0xff]  }
  0x46   :  { %1097 = vmatpush3.bf16.msra.mxu0 %v1394_v4  ;;  %1344 = vmatpush3.bf16.msra.mxu1 %v1394_v4  ;;  %v1398_v8 = vld [vmem:[%s1623_s29 + $0x28] sm:$0xff]   ;;  %v1400_v10 = vld [vmem:[%s1623_s29 + $0x20] sm:$0xff]   ;;  %v1402_v12 = vld [vmem:[%s1623_s29 + $0x18] sm:$0xff]  }
  0x47   :  { %1098 = vmatprep.subr.bf16.mxu0 %v1395_v5  ;;  %1337 = vmatprep.subr.bf16.mxu1 %v1395_v5  ;;  %v1403_v13 = vld [vmem:[%s1623_s29 + $0x50] sm:$0xff]   ;;  %v1405_v15 = vld [vmem:[%s1623_s29 + $0x48] sm:$0xff]   ;;  %v1407_v17 = vld [vmem:[%s1623_s29 + $0x40] sm:$0xff]  }
  0x48   :  { %v1404_v14 = vld [vmem:[%s1623_s29 + $0x10] sm:$0xff]   ;;  %v1406_v16 = vld [vmem:[%s1623_s29 + $0x8] sm:$0xff]   ;;  %v1408_v18 = vld [vmem:[%s1623_s29] sm:$0xff]  }
  0x49   :  { %v1409_v19 = vld [vmem:[#allocation6] ss:$8 sps:$4 sm:$0xff]   ;;  %v1415_v21 = vld [vmem:[#allocation6 + $0x14] ss:$8 sps:$4 sm:$0xff]   ;;  %v1419_v23 = vld [vmem:[#allocation6 + $0x10] ss:$8 sps:$4 sm:$0xff]  }
  0x4a   :  { %1099 = vmatpush3.bf16.msra.mxu0 %v1396_v6  ;;  %1345 = vmatpush3.bf16.msra.mxu1 %v1396_v6  ;;  %v1412_v20 = vld [vmem:[#allocation6 + $0x80] ss:$8 sps:$4 sm:$0xff]   ;;  %v1417_v22 = vld [vmem:[#allocation6 + $0x94] ss:$8 sps:$4 sm:$0xff]   ;;  %v1420_v24 = vld [vmem:[#allocation6 + $0x90] ss:$8 sps:$4 sm:$0xff]  }
  0x4b   :  { %1100 = vmatprep.subr.bf16.mxu0 %v1397_v7  ;;  %1338 = vmatprep.subr.bf16.mxu1 %v1397_v7  ;;  %v1421_v25 = vld [vmem:[#allocation6 + $0x24] ss:$8 sps:$4 sm:$0xff]   ;;  %v1425_v27 = vld [vmem:[#allocation6 + $0x20] ss:$8 sps:$4 sm:$0xff]   ;;  %v1427_v29 = vld [vmem:[#allocation6 + $0x34] ss:$8 sps:$4 sm:$0xff]  }
  0x4c   :  { %v1423_v26 = vld [vmem:[#allocation6 + $0xa4] ss:$8 sps:$4 sm:$0xff]   ;;  %v1426_v28 = vld [vmem:[#allocation6 + $0xa0] ss:$8 sps:$4 sm:$0xff]   ;;  %v1429_v30 = vld [vmem:[#allocation6 + $0xb4] ss:$8 sps:$4 sm:$0xff]  }
  0x4d   :  { %v1431_v31 = vld [vmem:[#allocation6 + $0x30] ss:$8 sps:$4 sm:$0xff]   ;;  %v1433_v33 = vld [vmem:[#allocation6 + $0x44] ss:$8 sps:$4 sm:$0xff]   ;;  %v1437_v35 = vld [vmem:[#allocation6 + $0x40] ss:$8 sps:$4 sm:$0xff]  }
  0x4e   :  { %1101 = vmatpush3.bf16.msra.mxu0 %v1398_v8  ;;  %1346 = vmatpush3.bf16.msra.mxu1 %v1398_v8  ;;  %v1432_v32 = vld [vmem:[#allocation6 + $0xb0] ss:$8 sps:$4 sm:$0xff]   ;;  %v1435_v34 = vld [vmem:[#allocation6 + $0xc4] ss:$8 sps:$4 sm:$0xff]   ;;  %v1438_v36 = vld [vmem:[#allocation6 + $0xc0] ss:$8 sps:$4 sm:$0xff]  }
  0x4f   :  { %1102 = vmatprep.subr.bf16.mxu0 %v1399_v9  ;;  %1339 = vmatprep.subr.bf16.mxu1 %v1399_v9  ;;  %v1439_v37 = vld [vmem:[#allocation6 + $0x54] ss:$8 sps:$4 sm:$0xff]   ;;  %v1443_v39 = vld [vmem:[#allocation6 + $0x50] ss:$8 sps:$4 sm:$0xff]   ;;  %v1445_v41 = vld [vmem:[#allocation6 + $0x64] ss:$8 sps:$4 sm:$0xff]  }
  0x50   :  { %v1441_v38 = vld [vmem:[#allocation6 + $0xd4] ss:$8 sps:$4 sm:$0xff]   ;;  %v1444_v40 = vld [vmem:[#allocation6 + $0xd0] ss:$8 sps:$4 sm:$0xff]   ;;  %v1447_v42 = vld [vmem:[#allocation6 + $0xe4] ss:$8 sps:$4 sm:$0xff]  }
  0x51   :  { %v1449_v43 = vld [vmem:[#allocation6 + $0x60] ss:$8 sps:$4 sm:$0xff]   ;;  %v1451_v45 = vld [vmem:[#allocation6 + $0x74] ss:$8 sps:$4 sm:$0xff]   ;;  %v1455_v47 = vld [vmem:[#allocation6 + $0x70] ss:$8 sps:$4 sm:$0xff]  }
  0x52   :  { %1103 = vmatpush3.bf16.msra.mxu0 %v1400_v10  ;;  %1347 = vmatpush3.bf16.msra.mxu1 %v1400_v10  ;;  %v1450_v44 = vld [vmem:[#allocation6 + $0xe0] ss:$8 sps:$4 sm:$0xff]   ;;  %v1453_v46 = vld [vmem:[#allocation6 + $0xf4] ss:$8 sps:$4 sm:$0xff]   ;;  %v1456_v48 = vld [vmem:[#allocation6 + $0xf0] ss:$8 sps:$4 sm:$0xff]  }
  0x53   :  { %1104 = vmatprep.subr.bf16.mxu0 %v1401_v11  ;;  %1340 = vmatprep.subr.bf16.mxu1 %v1401_v11  ;;  %v158_v51 = vld [vmem:[#allocation2 + $0xb0] sm:$0xff]  ;;  %v174_v53 = vld [vmem:[#allocation2 + $0x38] sm:$0xff]  ;;  %v159_v61 = vld [vmem:[#allocation2] sm:$0xff] }
  0x54   :  { %v175_v63 = vld [vmem:[#allocation2 + $0x58] sm:$0xff]  ;;  %v176_v9 = vld [vmem:[#allocation2 + $0x40] sm:$0xff] }
  0x55   :  { %v160_v7 = vld [vmem:[#allocation2 + $0xd8] sm:$0xff] }
  0x56   :  { %1105 = vmatpush3.bf16.msra.mxu0 %v1402_v12  ;;  %1348 = vmatpush3.bf16.msra.mxu1 %v1402_v12 }
  0x57   :  { %1106 = vmatprep.subr.bf16.mxu0 %v1403_v13  ;;  %1341 = vmatprep.subr.bf16.mxu1 %v1403_v13 }
  0x5a   :  { %1107 = vmatpush3.bf16.msra.mxu0 %v1404_v14  ;;  %1349 = vmatpush3.bf16.msra.mxu1 %v1404_v14 }
  0x5b   :  { %1108 = vmatprep.subr.bf16.mxu0 %v1405_v15  ;;  %1342 = vmatprep.subr.bf16.mxu1 %v1405_v15 }
  0x5e   :  { %1109 = vmatpush3.bf16.msra.mxu0 %v1406_v16  ;;  %1350 = vmatpush3.bf16.msra.mxu1 %v1406_v16 }
  0x5f   :  { %1110 = vmatprep.subr.bf16.mxu0 %v1407_v17  ;;  %1343 = vmatprep.subr.bf16.mxu1 %v1407_v17  ;;  %v161_v17 = vld [vmem:[#allocation2 + $0x18] sm:$0xff] }
  0x62   :  { %1111 = vmatpush3.bf16.msra.mxu0 %v1408_v18  ;;  %1351 = vmatpush3.bf16.msra.mxu1 %v1408_v18 }
  0x65   :  { %511 = vmatmul.mubr.bf16.vlgmr.msra.gmra.mxu0 %v1409_v19  ;;  %575 = vmatmul.mubr.bf16.vlgmr.msra.gmra.mxu1 %v1412_v20  ;;  %v177_v19 = vld [vmem:[#allocation2 + $0xc8] sm:$0xff] }
  0x66   :  { %518 = vmatprep.mubr.bf16.mxu0 %v1415_v21  ;;  %582 = vmatprep.mubr.bf16.mxu1 %v1417_v22 }
  0x6d   :  { %519 = vmatmul.mubr.bf16.gmra.mxu0 %v1419_v23  ;;  %583 = vmatmul.mubr.bf16.gmra.mxu1 %v1420_v24 }
  0x6e   :  { %526 = vmatprep.mubr.bf16.mxu0 %v1421_v25  ;;  %590 = vmatprep.mubr.bf16.mxu1 %v1423_v26 }
  0x75   :  { %527 = vmatmul.mubr.bf16.gmra.mxu0 %v1425_v27  ;;  %591 = vmatmul.mubr.bf16.gmra.mxu1 %v1426_v28  ;;  %v162_v27 = vld [vmem:[#allocation2 + $0x50] sm:$0xff] }
  0x76   :  { %534 = vmatprep.mubr.bf16.mxu0 %v1427_v29  ;;  %598 = vmatprep.mubr.bf16.mxu1 %v1429_v30  ;;  %v178_v29 = vld [vmem:[#allocation2 + $0xe0] sm:$0xff] }
  0x7d   :  { %535 = vmatmul.mubr.bf16.gmra.mxu0 %v1431_v31  ;;  %599 = vmatmul.mubr.bf16.gmra.mxu1 %v1432_v32 }
  0x7e   :  { %542 = vmatprep.mubr.bf16.mxu0 %v1433_v33  ;;  %606 = vmatprep.mubr.bf16.mxu1 %v1435_v34 }
  0x85   :  { %543 = vmatmul.mubr.bf16.gmra.mxu0 %v1437_v35  ;;  %607 = vmatmul.mubr.bf16.gmra.mxu1 %v1438_v36 }
  0x86   :  { %550 = vmatprep.mubr.bf16.mxu0 %v1439_v37  ;;  %614 = vmatprep.mubr.bf16.mxu1 %v1441_v38  ;;  %v163_v37 = vld [vmem:[#allocation2 + $0x68] sm:$0xff] }
  0x8d   :  { %551 = vmatmul.mubr.bf16.gmra.mxu0 %v1443_v39  ;;  %615 = vmatmul.mubr.bf16.gmra.mxu1 %v1444_v40  ;;  %v179_v39 = vld [vmem:[#allocation2 + $0x90] sm:$0xff] }
  0x8e   :  { %558 = vmatprep.mubr.bf16.mxu0 %v1445_v41  ;;  %622 = vmatprep.mubr.bf16.mxu1 %v1447_v42 }
  0x95   :  { %559 = vmatmul.mubr.bf16.gmra.mxu0 %v1449_v43  ;;  %623 = vmatmul.mubr.bf16.gmra.mxu1 %v1450_v44 }
  0x96   :  { %566 = vmatprep.mubr.bf16.mxu0 %v1451_v45  ;;  %630 = vmatprep.mubr.bf16.mxu1 %v1453_v46 }
  0x9d   :  { %567 = vmatmul.mubr.bf16.gmra.mxu0 %v1455_v47  ;;  %631 = vmatmul.mubr.bf16.gmra.mxu1 %v1456_v48  ;;  %v164_v47 = vld [vmem:[#allocation2 + $0x30] sm:$0xff] }
 0x125   :  { %v1112_v49 = vpop.f32.mrf.mxu0  ;;  %v1160_v50 = vpop.f32.mrf.mxu1 }
 0x127   :  { %v1113_v52 = vpop.f32.mrf.mxu0  ;;  %v1161_v54 = vpop.f32.mrf.mxu1 }
 0x128   :  { %v1114_v55 = vadd.f32 %v1113_v52, %v1112_v49  ;;  %v1162_v56 = vadd.f32 %v1161_v54, %v1160_v50  ;;  %v180_v49 = vld [vmem:[#allocation2 + $0x70] sm:$0xff] }
 0x129   :  { %v1115_v57 = vpop.f32.mrf.mxu0  ;;  %v1163_v58 = vpop.f32.mrf.mxu1 }
 0x12a   :  { %v639_v59 = vadd.f32 %v1114_v55, %v158_v51  ;;  %v655_v60 = vadd.f32 %v1162_v56, %v174_v53 }
 0x12b   :  { %v1116_v62 = vpop.f32.mrf.mxu0  ;;  %v1164_v0 = vpop.f32.mrf.mxu1 }
 0x12c   :  { %671 = vst [vmem:[#allocation2 + $0xb0] sm:$0xff] %v639_v59  ;;  %687 = vst [vmem:[#allocation2 + $0x38] sm:$0xff] %v655_v60  ;;  %v1117_v1 = vadd.f32 %v1116_v62, %v1115_v57  ;;  %v1165_v2 = vadd.f32 %v1164_v0, %v1163_v58  ;;  %v165_v57 = vld [vmem:[#allocation2 + $0x48] sm:$0xff]  ;;  %v181_v59 = vld [vmem:[#allocation2 + $0xc0] sm:$0xff] }
 0x12d   :  { %v1118_v3 = vpop.f32.mrf.mxu0  ;;  %v1166_v4 = vpop.f32.mrf.mxu1 }
 0x12e   :  { %v640_v5 = vadd.f32 %v1117_v1, %v159_v61  ;;  %v656_v6 = vadd.f32 %v1165_v2, %v175_v63 }
 0x12f   :  { %v1119_v8 = vpop.f32.mrf.mxu0  ;;  %v1167_v10 = vpop.f32.mrf.mxu1 }
 0x130   :  { %672 = vst [vmem:[#allocation2] sm:$0xff] %v640_v5  ;;  %688 = vst [vmem:[#allocation2 + $0x58] sm:$0xff] %v656_v6  ;;  %v1120_v11 = vadd.f32 %v1119_v8, %v1118_v3  ;;  %v1168_v12 = vadd.f32 %v1167_v10, %v1166_v4  ;;  %v166_v3 = vld [vmem:[#allocation2 + $0x80] sm:$0xff]  ;;  %v182_v5 = vld [vmem:[#allocation2 + $0xa8] sm:$0xff] }
 0x131   :  { %v1121_v13 = vpop.f32.mrf.mxu0  ;;  %v1169_v14 = vpop.f32.mrf.mxu1 }
 0x132   :  { %v641_v15 = vadd.f32 %v1120_v11, %v160_v7  ;;  %v657_v16 = vadd.f32 %v1168_v12, %v176_v9 }
 0x133   :  { %v1122_v18 = vpop.f32.mrf.mxu0  ;;  %v1170_v20 = vpop.f32.mrf.mxu1 }
 0x134   :  { %673 = vst [vmem:[#allocation2 + $0xd8] sm:$0xff] %v641_v15  ;;  %689 = vst [vmem:[#allocation2 + $0x40] sm:$0xff] %v657_v16  ;;  %v1123_v21 = vadd.f32 %v1122_v18, %v1121_v13  ;;  %v1171_v22 = vadd.f32 %v1170_v20, %v1169_v14  ;;  %v167_v13 = vld [vmem:[#allocation2 + $0x88] sm:$0xff]  ;;  %v183_v15 = vld [vmem:[#allocation2 + $0xd0] sm:$0xff] }
 0x135   :  { %v1124_v23 = vpop.f32.mrf.mxu0  ;;  %v1172_v24 = vpop.f32.mrf.mxu1 }
 0x136   :  { %v642_v25 = vadd.f32 %v1123_v21, %v161_v17  ;;  %v658_v26 = vadd.f32 %v1171_v22, %v177_v19 }
 0x137   :  { %v1125_v28 = vpop.f32.mrf.mxu0  ;;  %v1173_v30 = vpop.f32.mrf.mxu1 }
 0x138   :  { %674 = vst [vmem:[#allocation2 + $0x18] sm:$0xff] %v642_v25  ;;  %690 = vst [vmem:[#allocation2 + $0xc8] sm:$0xff] %v658_v26  ;;  %v1126_v31 = vadd.f32 %v1125_v28, %v1124_v23  ;;  %v1174_v32 = vadd.f32 %v1173_v30, %v1172_v24  ;;  %v168_v23 = vld [vmem:[#allocation2 + $0xe8] sm:$0xff]  ;;  %v184_v25 = vld [vmem:[#allocation2 + $0x10] sm:$0xff] }
 0x139   :  { %v1127_v33 = vpop.f32.mrf.mxu0  ;;  %v1175_v34 = vpop.f32.mrf.mxu1 }
 0x13a   :  { %v643_v35 = vadd.f32 %v1126_v31, %v162_v27  ;;  %v659_v36 = vadd.f32 %v1174_v32, %v178_v29 }
 0x13b   :  { %v1128_v38 = vpop.f32.mrf.mxu0  ;;  %v1176_v40 = vpop.f32.mrf.mxu1 }
 0x13c   :  { %675 = vst [vmem:[#allocation2 + $0x50] sm:$0xff] %v643_v35  ;;  %691 = vst [vmem:[#allocation2 + $0xe0] sm:$0xff] %v659_v36  ;;  %v1129_v41 = vadd.f32 %v1128_v38, %v1127_v33  ;;  %v1177_v42 = vadd.f32 %v1176_v40, %v1175_v34  ;;  %v169_v33 = vld [vmem:[#allocation2 + $0xb8] sm:$0xff]  ;;  %v185_v35 = vld [vmem:[#allocation2 + $0x28] sm:$0xff] }
 0x13d   :  { %v1130_v43 = vpop.f32.mrf.mxu0  ;;  %v1178_v44 = vpop.f32.mrf.mxu1 }
 0x13e   :  { %v644_v45 = vadd.f32 %v1129_v41, %v163_v37  ;;  %v660_v46 = vadd.f32 %v1177_v42, %v179_v39 }
 0x13f   :  { %v1131_v48 = vpop.f32.mrf.mxu0  ;;  %v1179_v50 = vpop.f32.mrf.mxu1 }
 0x140   :  { %676 = vst [vmem:[#allocation2 + $0x68] sm:$0xff] %v644_v45  ;;  %692 = vst [vmem:[#allocation2 + $0x90] sm:$0xff] %v660_v46  ;;  %v1132_v51 = vadd.f32 %v1131_v48, %v1130_v43  ;;  %v1180_v52 = vadd.f32 %v1179_v50, %v1178_v44  ;;  %v170_v43 = vld [vmem:[#allocation2 + $0x60] sm:$0xff] }
 0x141   :  { %v1133_v53 = vpop.f32.mrf.mxu0  ;;  %v1181_v54 = vpop.f32.mrf.mxu1  ;;  %v186_v45 = vld [vmem:[#allocation2 + $0xa0] sm:$0xff] }
 0x142   :  { %v645_v55 = vadd.f32 %v1132_v51, %v164_v47  ;;  %v661_v56 = vadd.f32 %v1180_v52, %v180_v49 }
 0x143   :  { %v1134_v58 = vpop.f32.mrf.mxu0  ;;  %v1182_v60 = vpop.f32.mrf.mxu1 }
 0x144   :  { %677 = vst [vmem:[#allocation2 + $0x30] sm:$0xff] %v645_v55  ;;  %693 = vst [vmem:[#allocation2 + $0x70] sm:$0xff] %v661_v56  ;;  %v1135_v61 = vadd.f32 %v1134_v58, %v1133_v53  ;;  %v1183_v62 = vadd.f32 %v1182_v60, %v1181_v54  ;;  %v171_v53 = vld [vmem:[#allocation2 + $0xf0] sm:$0xff]  ;;  %v187_v55 = vld [vmem:[#allocation2 + $0xf8] sm:$0xff] }
 0x145   :  { %v1136_v63 = vpop.f32.mrf.mxu0  ;;  %v1184_v0 = vpop.f32.mrf.mxu1 }
 0x146   :  { %v646_v1 = vadd.f32 %v1135_v61, %v165_v57  ;;  %v662_v2 = vadd.f32 %v1183_v62, %v181_v59 }
 0x147   :  { %v1137_v4 = vpop.f32.mrf.mxu0  ;;  %v1185_v6 = vpop.f32.mrf.mxu1 }
 0x148   :  { %678 = vst [vmem:[#allocation2 + $0x48] sm:$0xff] %v646_v1  ;;  %694 = vst [vmem:[#allocation2 + $0xc0] sm:$0xff] %v662_v2  ;;  %v1138_v7 = vadd.f32 %v1137_v4, %v1136_v63  ;;  %v1186_v8 = vadd.f32 %v1185_v6, %v1184_v0  ;;  %v172_v63 = vld [vmem:[#allocation2 + $0x8] sm:$0xff]  ;;  %v188_v1 = vld [vmem:[#allocation2 + $0x20] sm:$0xff] }
 0x149   :  { %v1139_v9 = vpop.f32.mrf.mxu0  ;;  %v1187_v10 = vpop.f32.mrf.mxu1 }
 0x14a   :  { %v647_v11 = vadd.f32 %v1138_v7, %v166_v3  ;;  %v663_v12 = vadd.f32 %v1186_v8, %v182_v5 }
 0x14b   :  { %v1140_v14 = vpop.f32.mrf.mxu0  ;;  %v1188_v16 = vpop.f32.mrf.mxu1 }
 0x14c   :  { %679 = vst [vmem:[#allocation2 + $0x80] sm:$0xff] %v647_v11  ;;  %695 = vst [vmem:[#allocation2 + $0xa8] sm:$0xff] %v663_v12  ;;  %v1141_v17 = vadd.f32 %v1140_v14, %v1139_v9  ;;  %v1189_v18 = vadd.f32 %v1188_v16, %v1187_v10  ;;  %v173_v9 = vld [vmem:[#allocation2 + $0x78] sm:$0xff] }
 0x14d   :  { %v1142_v19 = vpop.f32.mrf.mxu0  ;;  %v1190_v20 = vpop.f32.mrf.mxu1  ;;  %v189_v11 = vld [vmem:[#allocation2 + $0x98] sm:$0xff] }
 0x14e   :  { %v648_v21 = vadd.f32 %v1141_v17, %v167_v13  ;;  %v664_v22 = vadd.f32 %v1189_v18, %v183_v15 }
 0x14f   :  { %v1143_v24 = vpop.f32.mrf.mxu0  ;;  %v1191_v26 = vpop.f32.mrf.mxu1 }
 0x150   :  { %680 = vst [vmem:[#allocation2 + $0x88] sm:$0xff] %v648_v21  ;;  %696 = vst [vmem:[#allocation2 + $0xd0] sm:$0xff] %v664_v22  ;;  %v1144_v27 = vadd.f32 %v1143_v24, %v1142_v19  ;;  %v1192_v28 = vadd.f32 %v1191_v26, %v1190_v20 }
 0x151   :  { %v1145_v29 = vpop.f32.mrf.mxu0  ;;  %v1193_v30 = vpop.f32.mrf.mxu1 }
 0x152   :  { %v649_v31 = vadd.f32 %v1144_v27, %v168_v23  ;;  %v665_v32 = vadd.f32 %v1192_v28, %v184_v25 }
 0x153   :  { %v1146_v34 = vpop.f32.mrf.mxu0  ;;  %v1194_v36 = vpop.f32.mrf.mxu1 }
 0x154   :  { %681 = vst [vmem:[#allocation2 + $0xe8] sm:$0xff] %v649_v31  ;;  %697 = vst [vmem:[#allocation2 + $0x10] sm:$0xff] %v665_v32  ;;  %v1147_v37 = vadd.f32 %v1146_v34, %v1145_v29  ;;  %v1195_v38 = vadd.f32 %v1194_v36, %v1193_v30 }
 0x155   :  { %v1148_v39 = vpop.f32.mrf.mxu0  ;;  %v1196_v40 = vpop.f32.mrf.mxu1 }
 0x156   :  { %v650_v41 = vadd.f32 %v1147_v37, %v169_v33  ;;  %v666_v42 = vadd.f32 %v1195_v38, %v185_v35 }
 0x157   :  { %v1149_v44 = vpop.f32.mrf.mxu0  ;;  %v1197_v46 = vpop.f32.mrf.mxu1 }
 0x158   :  { %682 = vst [vmem:[#allocation2 + $0xb8] sm:$0xff] %v650_v41  ;;  %698 = vst [vmem:[#allocation2 + $0x28] sm:$0xff] %v666_v42  ;;  %v1150_v47 = vadd.f32 %v1149_v44, %v1148_v39  ;;  %v1198_v48 = vadd.f32 %v1197_v46, %v1196_v40 }
 0x159   :  { %v1151_v49 = vpop.f32.mrf.mxu0  ;;  %v1199_v50 = vpop.f32.mrf.mxu1 }
 0x15a   :  { %v651_v51 = vadd.f32 %v1150_v47, %v170_v43  ;;  %v667_v52 = vadd.f32 %v1198_v48, %v186_v45 }
 0x15b   :  { %v1152_v54 = vpop.f32.mrf.mxu0  ;;  %v1200_v56 = vpop.f32.mrf.mxu1 }
 0x15c   :  { %683 = vst [vmem:[#allocation2 + $0x60] sm:$0xff] %v651_v51  ;;  %699 = vst [vmem:[#allocation2 + $0xa0] sm:$0xff] %v667_v52  ;;  %v1153_v57 = vadd.f32 %v1152_v54, %v1151_v49  ;;  %v1201_v58 = vadd.f32 %v1200_v56, %v1199_v50 }
 0x15d   :  { %v1154_v59 = vpop.f32.mrf.mxu0  ;;  %v1202_v60 = vpop.f32.mrf.mxu1 }
 0x15e   :  { %v652_v61 = vadd.f32 %v1153_v57, %v171_v53  ;;  %v668_v62 = vadd.f32 %v1201_v58, %v187_v55 }
 0x15f   :  { %v1155_v0 = vpop.f32.mrf.mxu0  ;;  %v1203_v2 = vpop.f32.mrf.mxu1 }
 0x160   :  { %684 = vst [vmem:[#allocation2 + $0xf0] sm:$0xff] %v652_v61  ;;  %700 = vst [vmem:[#allocation2 + $0xf8] sm:$0xff] %v668_v62  ;;  %v1156_v3 = vadd.f32 %v1155_v0, %v1154_v59  ;;  %v1204_v4 = vadd.f32 %v1203_v2, %v1202_v60 }
 0x161   :  { %v1157_v5 = vpop.f32.mrf.mxu0  ;;  %v1205_v6 = vpop.f32.mrf.mxu1 }
 0x162   :  { %v653_v7 = vadd.f32 %v1156_v3, %v172_v63  ;;  %v669_v8 = vadd.f32 %v1204_v4, %v188_v1 }
 0x163   :  { %v1158_v10 = vpop.f32.mrf.mxu0  ;;  %v1206_v12 = vpop.f32.mrf.mxu1 }
 0x164   :  { %685 = vst [vmem:[#allocation2 + $0x8] sm:$0xff] %v653_v7  ;;  %701 = vst [vmem:[#allocation2 + $0x20] sm:$0xff] %v669_v8  ;;  %v1159_v13 = vadd.f32 %v1158_v10, %v1157_v5  ;;  %v1207_v14 = vadd.f32 %v1206_v12, %v1205_v6 }
 0x166   :  { %v654_v15 = vadd.f32 %v1159_v13, %v173_v9  ;;  %v670_v16 = vadd.f32 %v1207_v14, %v189_v11 }
 0x168   :  { %686 = vst [vmem:[#allocation2 + $0x78] sm:$0xff] %v654_v15  ;;  %702 = vst [vmem:[#allocation2 + $0x98] sm:$0xff] %v670_v16 }
 0x169 PF:  { %v753_v17 = vld [vmem:[#allocation11 + $0x78] sm:$0xff]  ;;  %v752_v18 = vld [vmem:[#allocation11 + $0x70] sm:$0xff]  ;;  %v751_v19 = vld [vmem:[#allocation11 + $0x68] sm:$0xff] }
 0x16a   :  { %1256 = vmatprep.subr.mxu0 %v753_v17  ;;  %1352 = vmatprep.subr.mxu1 %v753_v17  ;;  %v750_v20 = vld [vmem:[#allocation11 + $0x60] sm:$0xff]  ;;  %v749_v21 = vld [vmem:[#allocation11 + $0x58] sm:$0xff]  ;;  %v748_v22 = vld [vmem:[#allocation11 + $0x50] sm:$0xff] }
 0x16b   :  { %1257 = vmatpush3.msra.mxu0 %v753_v17  ;;  %1368 = vmatpush3.msra.mxu1 %v753_v17  ;;  %v747_v23 = vld [vmem:[#allocation11 + $0x48] sm:$0xff]  ;;  %v746_v24 = vld [vmem:[#allocation11 + $0x40] sm:$0xff]  ;;  %v745_v25 = vld [vmem:[#allocation11 + $0x38] sm:$0xff] }
 0x16c   :  { %1258 = vmatprep.subr.mxu0 %v752_v18  ;;  %1353 = vmatprep.subr.mxu1 %v752_v18  ;;  %v744_v26 = vld [vmem:[#allocation11 + $0x30] sm:$0xff]  ;;  %v743_v27 = vld [vmem:[#allocation11 + $0x28] sm:$0xff]  ;;  %v742_v28 = vld [vmem:[#allocation11 + $0x20] sm:$0xff] }
 0x16d   :  { %1259 = vmatpush3.msra.mxu0 %v752_v18  ;;  %1369 = vmatpush3.msra.mxu1 %v752_v18  ;;  %v741_v29 = vld [vmem:[#allocation11 + $0x18] sm:$0xff]  ;;  %v740_v30 = vld [vmem:[#allocation11 + $0x10] sm:$0xff]  ;;  %v739_v31 = vld [vmem:[#allocation11 + $0x8] sm:$0xff] }
 0x16e   :  { %1260 = vmatprep.subr.mxu0 %v751_v19  ;;  %1354 = vmatprep.subr.mxu1 %v751_v19  ;;  %v738_v32 = vld [vmem:[#allocation11] sm:$0xff]  ;;  %v706_v33 = vld [vmem:[#allocation2 + $0xb0] sm:$0xff]  ;;  %v722_v34 = vld [vmem:[#allocation2 + $0x38] sm:$0xff] }
 0x16f   :  { %1261 = vmatpush3.msra.mxu0 %v751_v19  ;;  %1370 = vmatpush3.msra.mxu1 %v751_v19  ;;  %v707_v35 = vld [vmem:[#allocation2] sm:$0xff]  ;;  %v723_v36 = vld [vmem:[#allocation2 + $0x58] sm:$0xff]  ;;  %v725_v40 = vld [vmem:[#allocation2 + $0xc8] sm:$0xff] }
 0x170   :  { %1262 = vmatprep.subr.mxu0 %v750_v20  ;;  %1355 = vmatprep.subr.mxu1 %v750_v20  ;;  %v708_v37 = vld [vmem:[#allocation2 + $0xd8] sm:$0xff]  ;;  %v724_v38 = vld [vmem:[#allocation2 + $0x40] sm:$0xff]  ;;  %v710_v41 = vld [vmem:[#allocation2 + $0x50] sm:$0xff] }
 0x171   :  { %1263 = vmatpush3.msra.mxu0 %v750_v20  ;;  %1371 = vmatpush3.msra.mxu1 %v750_v20  ;;  %v709_v39 = vld [vmem:[#allocation2 + $0x18] sm:$0xff]  ;;  %v726_v42 = vld [vmem:[#allocation2 + $0xe0] sm:$0xff]  ;;  %v711_v43 = vld [vmem:[#allocation2 + $0x68] sm:$0xff] }
 0x172   :  { %1264 = vmatprep.subr.mxu0 %v749_v21  ;;  %1356 = vmatprep.subr.mxu1 %v749_v21  ;;  %v727_v44 = vld [vmem:[#allocation2 + $0x90] sm:$0xff]  ;;  %v713_v47 = vld [vmem:[#allocation2 + $0x48] sm:$0xff]  ;;  %v729_v48 = vld [vmem:[#allocation2 + $0xc0] sm:$0xff] }
 0x173   :  { %1265 = vmatpush3.msra.mxu0 %v749_v21  ;;  %1372 = vmatpush3.msra.mxu1 %v749_v21  ;;  %v712_v45 = vld [vmem:[#allocation2 + $0x30] sm:$0xff]  ;;  %v714_v49 = vld [vmem:[#allocation2 + $0x80] sm:$0xff]  ;;  %v730_v50 = vld [vmem:[#allocation2 + $0xa8] sm:$0xff] }
 0x174   :  { %1266 = vmatprep.subr.mxu0 %v748_v22  ;;  %1357 = vmatprep.subr.mxu1 %v748_v22  ;;  %v728_v46 = vld [vmem:[#allocation2 + $0x70] sm:$0xff]  ;;  %v715_v51 = vld [vmem:[#allocation2 + $0x88] sm:$0xff]  ;;  %v717_v55 = vld [vmem:[#allocation2 + $0xb8] sm:$0xff] }
 0x175   :  { %1267 = vmatpush3.msra.mxu0 %v748_v22  ;;  %1373 = vmatpush3.msra.mxu1 %v748_v22  ;;  %v731_v52 = vld [vmem:[#allocation2 + $0xd0] sm:$0xff]  ;;  %v716_v53 = vld [vmem:[#allocation2 + $0xe8] sm:$0xff]  ;;  %v718_v57 = vld [vmem:[#allocation2 + $0x60] sm:$0xff] }
 0x176   :  { %1268 = vmatprep.subr.mxu0 %v747_v23  ;;  %1358 = vmatprep.subr.mxu1 %v747_v23  ;;  %v732_v54 = vld [vmem:[#allocation2 + $0x10] sm:$0xff]  ;;  %v733_v56 = vld [vmem:[#allocation2 + $0x28] sm:$0xff]  ;;  %v734_v58 = vld [vmem:[#allocation2 + $0xa0] sm:$0xff] }
 0x177   :  { %1269 = vmatpush3.msra.mxu0 %v747_v23  ;;  %1374 = vmatpush3.msra.mxu1 %v747_v23  ;;  %v719_v59 = vld [vmem:[#allocation2 + $0xf0] sm:$0xff]  ;;  %v735_v60 = vld [vmem:[#allocation2 + $0xf8] sm:$0xff]  ;;  %v720_v61 = vld [vmem:[#allocation2 + $0x8] sm:$0xff] }
 0x178   :  { %1270 = vmatprep.subr.mxu0 %v746_v24  ;;  %1359 = vmatprep.subr.mxu1 %v746_v24  ;;  %v736_v62 = vld [vmem:[#allocation2 + $0x20] sm:$0xff]  ;;  %v721_v63 = vld [vmem:[#allocation2 + $0x78] sm:$0xff] }
 0x179   :  { %1271 = vmatpush3.msra.mxu0 %v746_v24  ;;  %1375 = vmatpush3.msra.mxu1 %v746_v24  ;;  %v737_v0 = vld [vmem:[#allocation2 + $0x98] sm:$0xff]  ;;  %v1644_v1 = vld [vmem:[%s1689_s5] ss:$0 sm:$0xff]  ;;  %s1553_s5 = smov [#allocation12]  }
 0x17a   :  { %1272 = vmatprep.subr.mxu0 %v745_v25  ;;  %1360 = vmatprep.subr.mxu1 %v745_v25  ;;  %s1023_s0 = sshll.u32 %s1553_s5, 4  ;;  %s1024_s0 = int_to_ptr.vmem [resolvable:$true] %s1023_s0 }
 0x17b   :  { %1273 = vmatpush3.msra.mxu0 %v745_v25  ;;  %1376 = vmatpush3.msra.mxu1 %v745_v25  ;;  %s1519_s7 = scalar_lea.vmem %s1024_s0, 4096  ;;  %p1524_p8 = scmp.lt.s32.totalorder %s1024_s0, %s1024_s0 }
 0x17c   :  { %1274 = vmatprep.subr.mxu0 %v744_v26  ;;  %1361 = vmatprep.subr.mxu1 %v744_v26  ;;  %p1520_p7 = scmp.ne.s32.totalorder %s1024_s0, %s1519_s7  ;;  %p1525_p9 = scmp.lt.s32.totalorder %s1519_s7, %s1519_s7 }
 0x17d   :  { %1275 = vmatpush3.msra.mxu0 %v744_v26  ;;  %1377 = vmatpush3.msra.mxu1 %v744_v26 }
 0x17e   :  { %1276 = vmatprep.subr.mxu0 %v743_v27  ;;  %1362 = vmatprep.subr.mxu1 %v743_v27  ;;  %p1526_p10 = por %p1525_p9, %p1524_p8 }
 0x17f   :  { %1277 = vmatpush3.msra.mxu0 %v743_v27  ;;  %1378 = vmatpush3.msra.mxu1 %v743_v27 }
 0x180   :  { %1278 = vmatprep.subr.mxu0 %v742_v28  ;;  %1363 = vmatprep.subr.mxu1 %v742_v28  ;;  %p1527_p11 = pnand %p1526_p10, %p1520_p7 }
 0x181   :  { %1279 = vmatpush3.msra.mxu0 %v742_v28  ;;  %1379 = vmatpush3.msra.mxu1 %v742_v28 }
 0x182   :  { %1280 = vmatprep.subr.mxu0 %v741_v29  ;;  %1364 = vmatprep.subr.mxu1 %v741_v29 }
 0x183   :  { %1281 = vmatpush3.msra.mxu0 %v741_v29  ;;  %1380 = vmatpush3.msra.mxu1 %v741_v29 }
 0x184   :  { %1282 = vmatprep.subr.mxu0 %v740_v30  ;;  %1365 = vmatprep.subr.mxu1 %v740_v30 }
 0x185   :  { %1283 = vmatpush3.msra.mxu0 %v740_v30  ;;  %1381 = vmatpush3.msra.mxu1 %v740_v30 }
 0x186   :  { %1284 = vmatprep.subr.mxu0 %v739_v31  ;;  %1366 = vmatprep.subr.mxu1 %v739_v31 }
 0x187   :  { %1285 = vmatpush3.msra.mxu0 %v739_v31  ;;  %1382 = vmatpush3.msra.mxu1 %v739_v31 }
 0x188   :  { %1286 = vmatprep.subr.mxu0 %v738_v32  ;;  %1367 = vmatprep.subr.mxu1 %v738_v32 }
 0x189   :  { %1287 = vmatpush3.msra.mxu0 %v738_v32  ;;  %1383 = vmatpush3.msra.mxu1 %v738_v32 }
 0x18a   :  { %1288 = vmatprep.mubr.f32.mxu0 %v706_v33  ;;  %1312 = vmatprep.mubr.f32.mxu1 %v722_v34 }
 0x18b   :  { %1289 = vmatmul.mubr.f32.vlgmr.msra.gmra.mxu0 %v707_v35  ;;  %1313 = vmatmul.mubr.f32.vlgmr.msra.gmra.mxu1 %v723_v36 }
 0x18c   :  { %1291 = vmatprep.mubr.f32.mxu0 %v708_v37  ;;  %1315 = vmatprep.mubr.f32.mxu1 %v724_v38 }
 0x18f   :  { %1292 = vmatmul.mubr.f32.gmra.mxu0 %v709_v39  ;;  %1316 = vmatmul.mubr.f32.gmra.mxu1 %v725_v40 }
 0x190   :  { %1294 = vmatprep.mubr.f32.mxu0 %v710_v41  ;;  %1318 = vmatprep.mubr.f32.mxu1 %v726_v42 }
 0x193   :  { %1295 = vmatmul.mubr.f32.gmra.mxu0 %v711_v43  ;;  %1319 = vmatmul.mubr.f32.gmra.mxu1 %v727_v44 }
 0x194   :  { %1297 = vmatprep.mubr.f32.mxu0 %v712_v45  ;;  %1321 = vmatprep.mubr.f32.mxu1 %v728_v46 }
 0x197   :  { %1298 = vmatmul.mubr.f32.gmra.mxu0 %v713_v47  ;;  %1322 = vmatmul.mubr.f32.gmra.mxu1 %v729_v48 }
 0x198   :  { %1300 = vmatprep.mubr.f32.mxu0 %v714_v49  ;;  %1324 = vmatprep.mubr.f32.mxu1 %v730_v50 }
 0x19b   :  { %1301 = vmatmul.mubr.f32.gmra.mxu0 %v715_v51  ;;  %1325 = vmatmul.mubr.f32.gmra.mxu1 %v731_v52 }
 0x19c   :  { %1303 = vmatprep.mubr.f32.mxu0 %v716_v53  ;;  %1327 = vmatprep.mubr.f32.mxu1 %v732_v54 }
 0x19f   :  { %1304 = vmatmul.mubr.f32.gmra.mxu0 %v717_v55  ;;  %1328 = vmatmul.mubr.f32.gmra.mxu1 %v733_v56 }
 0x1a0   :  { %1306 = vmatprep.mubr.f32.mxu0 %v718_v57  ;;  %1330 = vmatprep.mubr.f32.mxu1 %v734_v58 }
 0x1a3   :  { %1307 = vmatmul.mubr.f32.gmra.mxu0 %v719_v59  ;;  %1331 = vmatmul.mubr.f32.gmra.mxu1 %v735_v60 }
 0x1a4   :  { %1309 = vmatprep.mubr.f32.mxu0 %v720_v61  ;;  %1333 = vmatprep.mubr.f32.mxu1 %v736_v62 }
 0x1a7   :  { %1310 = vmatmul.mubr.f32.gmra.mxu0 %v721_v63  ;;  %1334 = vmatmul.mubr.f32.gmra.mxu1 %v737_v0 }
 0x24b   :  { %v1290_v2 = vpop.f32.mrf.mxu0  ;;  %v1314_v3 = vpop.f32.mrf.mxu1 }
 0x24c   :  { %v833_v4 = vadd.f32 %v1290_v2, %v1644_v1  ;;  %v913_v5 = vadd.f32 %v1314_v3, %v1644_v1 }
 0x24d   :  { %v827_v6 = vpop.f32.mrf.mxu0  ;;  %v907_v7 = vpop.f32.mrf.mxu1 }
 0x24e   :  { %987 = vst [vmem:[#allocation12 + $0x8] sm:$0xff] %v833_v4  ;;  %1003 = vst [vmem:[#allocation12 + $0x88] sm:$0xff] %v913_v5  ;;  %v828_v8 = vadd.f32 %v1644_v1, %v827_v6  ;;  %v908_v9 = vadd.f32 %v1644_v1, %v907_v7 }
 0x24f   :  { %v1293_v10 = vpop.f32.mrf.mxu0  ;;  %v1317_v11 = vpop.f32.mrf.mxu1 }
 0x250   :  { %986 = vst [vmem:[#allocation12] sm:$0xff] %v828_v8  ;;  %1002 = vst [vmem:[#allocation12 + $0x80] sm:$0xff] %v908_v9  ;;  %v843_v12 = vadd.f32 %v1293_v10, %v1644_v1  ;;  %v923_v13 = vadd.f32 %v1317_v11, %v1644_v1 }
 0x251   :  { %v837_v14 = vpop.f32.mrf.mxu0  ;;  %v917_v15 = vpop.f32.mrf.mxu1 }
 0x252   :  { %989 = vst [vmem:[#allocation12 + $0x18] sm:$0xff] %v843_v12  ;;  %1005 = vst [vmem:[#allocation12 + $0x98] sm:$0xff] %v923_v13  ;;  %v838_v16 = vadd.f32 %v1644_v1, %v837_v14  ;;  %v918_v17 = vadd.f32 %v1644_v1, %v917_v15 }
 0x253   :  { %v1296_v18 = vpop.f32.mrf.mxu0  ;;  %v1320_v19 = vpop.f32.mrf.mxu1 }
 0x254   :  { %988 = vst [vmem:[#allocation12 + $0x10] sm:$0xff] %v838_v16  ;;  %1004 = vst [vmem:[#allocation12 + $0x90] sm:$0xff] %v918_v17  ;;  %v853_v20 = vadd.f32 %v1296_v18, %v1644_v1  ;;  %v933_v21 = vadd.f32 %v1320_v19, %v1644_v1 }
 0x255   :  { %v847_v22 = vpop.f32.mrf.mxu0  ;;  %v927_v23 = vpop.f32.mrf.mxu1 }
 0x256   :  { %991 = vst [vmem:[#allocation12 + $0x28] sm:$0xff] %v853_v20  ;;  %1007 = vst [vmem:[#allocation12 + $0xa8] sm:$0xff] %v933_v21  ;;  %v848_v24 = vadd.f32 %v1644_v1, %v847_v22  ;;  %v928_v25 = vadd.f32 %v1644_v1, %v927_v23 }
 0x257   :  { %v1299_v26 = vpop.f32.mrf.mxu0  ;;  %v1323_v27 = vpop.f32.mrf.mxu1 }
 0x258   :  { %990 = vst [vmem:[#allocation12 + $0x20] sm:$0xff] %v848_v24  ;;  %1006 = vst [vmem:[#allocation12 + $0xa0] sm:$0xff] %v928_v25  ;;  %v863_v28 = vadd.f32 %v1299_v26, %v1644_v1  ;;  %v943_v29 = vadd.f32 %v1323_v27, %v1644_v1 }
 0x259   :  { %v857_v30 = vpop.f32.mrf.mxu0  ;;  %v937_v31 = vpop.f32.mrf.mxu1 }
 0x25a   :  { %993 = vst [vmem:[#allocation12 + $0x38] sm:$0xff] %v863_v28  ;;  %1009 = vst [vmem:[#allocation12 + $0xb8] sm:$0xff] %v943_v29  ;;  %v858_v32 = vadd.f32 %v1644_v1, %v857_v30  ;;  %v938_v33 = vadd.f32 %v1644_v1, %v937_v31 }
 0x25b   :  { %v1302_v34 = vpop.f32.mrf.mxu0  ;;  %v1326_v35 = vpop.f32.mrf.mxu1 }
 0x25c   :  { %992 = vst [vmem:[#allocation12 + $0x30] sm:$0xff] %v858_v32  ;;  %1008 = vst [vmem:[#allocation12 + $0xb0] sm:$0xff] %v938_v33  ;;  %v873_v36 = vadd.f32 %v1302_v34, %v1644_v1  ;;  %v953_v37 = vadd.f32 %v1326_v35, %v1644_v1 }
 0x25d   :  { %v867_v38 = vpop.f32.mrf.mxu0  ;;  %v947_v39 = vpop.f32.mrf.mxu1 }
 0x25e   :  { %995 = vst [vmem:[#allocation12 + $0x48] sm:$0xff] %v873_v36  ;;  %1011 = vst [vmem:[#allocation12 + $0xc8] sm:$0xff] %v953_v37  ;;  %v868_v40 = vadd.f32 %v1644_v1, %v867_v38  ;;  %v948_v41 = vadd.f32 %v1644_v1, %v947_v39 }
 0x25f   :  { %v1305_v42 = vpop.f32.mrf.mxu0  ;;  %v1329_v43 = vpop.f32.mrf.mxu1 }
 0x260   :  { %994 = vst [vmem:[#allocation12 + $0x40] sm:$0xff] %v868_v40  ;;  %1010 = vst [vmem:[#allocation12 + $0xc0] sm:$0xff] %v948_v41  ;;  %v883_v44 = vadd.f32 %v1305_v42, %v1644_v1  ;;  %v963_v45 = vadd.f32 %v1329_v43, %v1644_v1 }
 0x261   :  { %v877_v46 = vpop.f32.mrf.mxu0  ;;  %v957_v47 = vpop.f32.mrf.mxu1 }
 0x262   :  { %997 = vst [vmem:[#allocation12 + $0x58] sm:$0xff] %v883_v44  ;;  %1013 = vst [vmem:[#allocation12 + $0xd8] sm:$0xff] %v963_v45  ;;  %v878_v48 = vadd.f32 %v1644_v1, %v877_v46  ;;  %v958_v49 = vadd.f32 %v1644_v1, %v957_v47 }
 0x263   :  { %v1308_v50 = vpop.f32.mrf.mxu0  ;;  %v1332_v51 = vpop.f32.mrf.mxu1 }
 0x264   :  { %996 = vst [vmem:[#allocation12 + $0x50] sm:$0xff] %v878_v48  ;;  %1012 = vst [vmem:[#allocation12 + $0xd0] sm:$0xff] %v958_v49  ;;  %v893_v52 = vadd.f32 %v1308_v50, %v1644_v1  ;;  %v973_v53 = vadd.f32 %v1332_v51, %v1644_v1 }
 0x265   :  { %v887_v54 = vpop.f32.mrf.mxu0  ;;  %v967_v55 = vpop.f32.mrf.mxu1 }
 0x266   :  { %999 = vst [vmem:[#allocation12 + $0x68] sm:$0xff] %v893_v52  ;;  %1015 = vst [vmem:[#allocation12 + $0xe8] sm:$0xff] %v973_v53  ;;  %v888_v56 = vadd.f32 %v1644_v1, %v887_v54  ;;  %v968_v57 = vadd.f32 %v1644_v1, %v967_v55 }
 0x267   :  { %v1311_v58 = vpop.f32.mrf.mxu0  ;;  %v1335_v59 = vpop.f32.mrf.mxu1 }
 0x268   :  { %998 = vst [vmem:[#allocation12 + $0x60] sm:$0xff] %v888_v56  ;;  %1014 = vst [vmem:[#allocation12 + $0xe0] sm:$0xff] %v968_v57  ;;  %v903_v60 = vadd.f32 %v1311_v58, %v1644_v1  ;;  %v983_v61 = vadd.f32 %v1335_v59, %v1644_v1 }
 0x269   :  { %v897_v62 = vpop.f32.mrf.mxu0  ;;  %v977_v63 = vpop.f32.mrf.mxu1 }
 0x26a   :  { %1001 = vst [vmem:[#allocation12 + $0x78] sm:$0xff] %v903_v60  ;;  %1017 = vst [vmem:[#allocation12 + $0xf8] sm:$0xff] %v983_v61  ;;  %v898_v0 = vadd.f32 %v1644_v1, %v897_v62  ;;  %v978_v2 = vadd.f32 %v1644_v1, %v977_v63 }
 0x26c   :  { %1000 = vst [vmem:[#allocation12 + $0x70] sm:$0xff] %v898_v0  ;;  %1016 = vst [vmem:[#allocation12 + $0xf0] sm:$0xff] %v978_v2 }
 0x26d   :  { %1530 = shalt.err (!%p1527_p11)
}
 0x26e   :  { %1029 = dma.vmem_to_hbm [thread:$0]  %s1024_s0, 4096, %s1690_s6, [#allocation8], %s1550_s20, %s1550_s20, %s1551_s21  }
 0x26f   :  { %1543 = dma.done.wait [#allocation8], 4096  }
 0x270   :  { %1544 = vsyncadd [#allocation8], 4294963200 }
 0x271   :  { %1033 = vsyncpa [#allocation7], 1 }
 0x272   :  { %1034 = vsyncpa [#allocation10], 1 }
 0x273   :  { %1035 = vsyncpa [#allocation8], 1 }

</bundles_post_ra>
